<compile_context>
chip_gen: v6e
topology: v6e:2x2x1
jax: 0.10.0
libtpu: 0.0.40
codegen_flags: <defaults>
</compile_context>

<pallas_src>
import jax
import jax.numpy as jnp
from jax.experimental import pallas as pl
from jax.experimental.pallas import tpu as pltpu

_MIB = 1024 * 1024
_BLOCK_BUDGET = 2 * _MIB      # per data-block byte cap (HBM roofline saturates here)
_PARAM_ROW_CAP = 4096         # caps padded (blk_rows, 128) f32 params tile at ~2 MiB


def _round_up(x, m):
    return ((x + m - 1) // m) * m


def _bn_relu_rowparam_kernel(x_ref, p_ref, o_ref):
    # x_ref: (blk_rows, blk_lanes) native dtype; p_ref: (blk_rows, 2) f32
    x = x_ref[...].astype(jnp.float32)
    scale = p_ref[:, 0:1]
    shift = p_ref[:, 1:2]
    o_ref[...] = jnp.maximum(x * scale + shift, 0.0).astype(o_ref.dtype)


def _bn_relu_laneparam_kernel(x_ref, p_ref, o_ref):
    # x_ref: (blk_rows, blk_lanes) native dtype; p_ref: (2, blk_lanes) f32
    x = x_ref[...].astype(jnp.float32)
    scale = p_ref[0:1, :]
    shift = p_ref[1:2, :]
    o_ref[...] = jnp.maximum(x * scale + shift, 0.0).astype(o_ref.dtype)


def _vmem_capacity_bytes():
    """Per-TensorCore VMEM capacity; v7x-safe 64 MiB fallback."""
    try:
        info = pltpu.get_tpu_info()
        cap = getattr(info, "vmem_capacity_bytes", None)
        if cap:
            return int(cap)
    except Exception:
        pass
    return 64 * _MIB


def _is_dual_tensorcore():
    """True on chips with 2 TensorCores per chip (v7x)."""
    try:
        kind = (getattr(jax.devices()[0], "device_kind", "") or "").lower()
        return "v7" in kind
    except Exception:
        return False


def _choose_tiling(rows, lanes, itemsize, dual_core):
    # ---- lane (last-dim) block: multiple of 128 whenever lanes >= 128, even
    # when lanes itself is not a 128-multiple (final edge block is masked). ----
    if lanes < 128:
        blk_lanes = lanes                                     # full-extent block (legal)
    else:
        min_row_blk = rows if rows < 8 else 8
        budget_lanes = max(128, (_BLOCK_BUDGET // (min_row_blk * itemsize)) // 128 * 128)
        blk_lanes = min((lanes // 128) * 128, budget_lanes)

    # ---- row (second-minor) block: multiple of 8 (or full extent),
    # budget- and params-padding-capped. ----
    if rows <= 8:
        blk_rows = rows                                       # full-extent block
    else:
        budget_rows = max(8, (_BLOCK_BUDGET // (blk_lanes * itemsize)) // 8 * 8)
        blk_rows = min(rows, budget_rows, _PARAM_ROW_CAP)
        if blk_rows < rows:
            blk_rows = max(8, (blk_rows // 8) * 8)

    # ---- v7x megacore: aim for >= 4 balanced grid steps; skip on 1-TC chips. ----
    if dual_core:
        while pl.cdiv(rows, blk_rows) * pl.cdiv(lanes, blk_lanes) < 4:
            if blk_rows >= 16:
                blk_rows = max(8, ((blk_rows // 2) // 8) * 8)
            elif blk_lanes >= 256:
                blk_lanes = max(128, ((blk_lanes // 2) // 128) * 128)
            else:
                break

    return blk_rows, blk_lanes


def bn_relu_nchw(x, gamma, beta, running_mean, running_var, eps=1e-5):
    """Fused eval-mode BatchNorm2d + ReLU on NCHW input; output keeps x.dtype."""
    n, c, h, w = x.shape
    hw = h * w
    itemsize = jnp.dtype(x.dtype).itemsize

    # Fold BN into per-channel (scale, shift) in f32.
    scale_c = gamma.astype(jnp.float32) / jnp.sqrt(running_var.astype(jnp.float32) + eps)
    shift_c = beta.astype(jnp.float32) - running_mean.astype(jnp.float32) * scale_c

    if hw >= 128:
        # Layout A: rows = N*C (per-row params), lanes = H*W.
        rows, lanes = n * c, hw
        params = jnp.stack([jnp.tile(scale_c, (n,)),
                            jnp.tile(shift_c, (n,))], axis=-1)           # (rows, 2) f32
        per_row_params = True
    else:
        # Layout B: rows = N, lanes = C*H*W (per-lane params) so small feature
        # maps still get lane-dense stores.
        rows, lanes = n, c * hw
        params = jnp.stack([jnp.repeat(scale_c, hw),
                            jnp.repeat(shift_c, hw)], axis=0)            # (2, lanes) f32
        per_row_params = False

    x2d = x.reshape(rows, lanes)
    dual_core = _is_dual_tensorcore()
    blk_rows, blk_lanes = _choose_tiling(rows, lanes, itemsize, dual_core)
    grid = (pl.cdiv(rows, blk_rows), pl.cdiv(lanes, blk_lanes))
    total_steps = grid[0] * grid[1]

    # VMEM accounting with (8, 128) layout padding.
    pr = _round_up(blk_rows, 8)
    pln = _round_up(blk_lanes, 128)
    data_blk_vmem = pr * pln * itemsize
    param_blk_vmem = pr * 128 * 4 if per_row_params else 8 * pln * 4

    # Deeper pipelining only pays off for tiny blocks on a non-trivial grid.
    deep_pipeline = (data_blk_vmem < 1 * _MIB) and (total_steps >= 4)
    n_buf = 3 if deep_pipeline else 2

    vmem_needed = n_buf * 2 * data_blk_vmem + n_buf * param_blk_vmem
    vmem_limit = max(int(vmem_needed * 5 // 4), 16 * _MIB)
    vmem_limit = min(vmem_limit, int(_vmem_capacity_bytes() * 3 // 4))

    def make_data_spec():
        if deep_pipeline:
            return pl.BlockSpec((blk_rows, blk_lanes), lambda i, j: (i, j),
                                pipeline_mode=pl.Buffered(3))
        return pl.BlockSpec((blk_rows, blk_lanes), lambda i, j: (i, j))

    if per_row_params:
        param_spec = pl.BlockSpec((blk_rows, 2), lambda i, j: (i, 0))
        kernel = _bn_relu_rowparam_kernel
    else:
        param_spec = pl.BlockSpec((2, blk_lanes), lambda i, j: (0, j))
        kernel = _bn_relu_laneparam_kernel

    cost = pl.CostEstimate(
        flops=3 * rows * lanes,                                # mul + add + max per element
        transcendentals=0,
        bytes_accessed=2 * rows * lanes * itemsize + int(params.size) * 4,
    )

    out2d = pl.pallas_call(
        kernel,
        out_shape=jax.ShapeDtypeStruct((rows, lanes), x2d.dtype),
        grid_spec=pltpu.PrefetchScalarGridSpec(
            num_scalar_prefetch=0,
            grid=grid,
            in_specs=[make_data_spec(), param_spec],
            out_specs=make_data_spec(),
        ),
        compiler_params=pltpu.CompilerParams(
            dimension_semantics=("parallel", "parallel"),
            vmem_limit_bytes=vmem_limit,
        ),
        cost_estimate=cost,
    )(x2d, params)

    return out2d.reshape(n, c, h, w)


def reference_bn_relu(x, gamma, beta, running_mean, running_var, eps=1e-5):
    x = x.astype(jnp.float32)
    inv = 1.0 / jnp.sqrt(running_var + eps)
    y = (x - running_mean[None, :, None, None]) * inv[None, :, None, None]
    y = y * gamma[None, :, None, None] + beta[None, :, None, None]
    return jnp.maximum(y, 0.0)


def _make_bn_params(key, c):
    kg, kb, km, kv = jax.random.split(key, 4)
    gamma = 1.0 + 0.1 * jax.random.normal(kg, (c,), dtype=jnp.float32)
    beta = 0.1 * jax.random.normal(kb, (c,), dtype=jnp.float32)
    running_mean = 0.2 * jax.random.normal(km, (c,), dtype=jnp.float32)
    running_var = jnp.abs(1.0 + 0.1 * jax.random.normal(kv, (c,), dtype=jnp.float32))
    return gamma, beta, running_mean, running_var


if __name__ == "__main__":
    key = jax.random.PRNGKey(0)
    kx1, kp1, kx2, kp2 = jax.random.split(key, 4)

    # --- Case 1: hw >= 128 path (layout A, per-row params), f32 ---
    N, C, H, W = 2, 4, 16, 16
    x = jax.random.normal(kx1, (N, C, H, W), dtype=jnp.float32)
    gamma, beta, rm, rv = _make_bn_params(kp1, C)

    out = jax.block_until_ready(bn_relu_nchw(x, gamma, beta, rm, rv))
    ref = reference_bn_relu(x, gamma, beta, rm, rv)
    assert out.shape == (N, C, H, W)
    assert out.dtype == jnp.float32
    assert jnp.allclose(out, ref, atol=1e-5, rtol=1e-5)

    # --- Case 1b: bf16 in/out (native dtype on the wire, f32 math in-kernel) ---
    x_bf16 = x.astype(jnp.bfloat16)
    out_bf16 = jax.block_until_ready(bn_relu_nchw(x_bf16, gamma, beta, rm, rv))
    ref_bf16 = reference_bn_relu(x_bf16, gamma, beta, rm, rv)
    assert out_bf16.dtype == jnp.bfloat16
    assert jnp.allclose(out_bf16.astype(jnp.float32), ref_bf16, atol=3e-2, rtol=3e-2)

    # --- Case 2: hw < 128 path (layout B, per-lane params, masked final lane block) ---
    N2, C2, H2, W2 = 2, 8, 7, 7
    x2 = jax.random.normal(kx2, (N2, C2, H2, W2), dtype=jnp.float32)
    gamma2, beta2, rm2, rv2 = _make_bn_params(kp2, C2)

    out2 = jax.block_until_ready(bn_relu_nchw(x2, gamma2, beta2, rm2, rv2))
    ref2 = reference_bn_relu(x2, gamma2, beta2, rm2, rv2)
    assert out2.shape == (N2, C2, H2, W2)
    assert jnp.allclose(out2, ref2, atol=1e-5, rtol=1e-5)

    print("KERNEL_OK")
</pallas_src>

<mosaic_0001>
module attributes {stable_mosaic.version = 11 : i64} {
  func.func @_bn_relu_rowparam_kernel(%arg0: i32, %arg1: i32, %arg2: memref<8x256xf32, #tpu.memory_space<vmem>>, %arg3: memref<8x2xf32, #tpu.memory_space<vmem>>, %arg4: memref<8x256xf32, #tpu.memory_space<vmem>>) attributes {dimension_semantics = [#tpu.dimension_semantics<parallel>, #tpu.dimension_semantics<parallel>], iteration_bounds = array<i64: 1, 1>, scalar_prefetch = 0 : i64, scratch_operands = 0 : i64, tpu.core_type = #tpu.core_type<tc>, window_params = [{transform_indices = @transform_0, window_bounds = array<i64: 8, 256>}, {transform_indices = @transform_1, window_bounds = array<i64: 8, 2>}, {transform_indices = @transform_2, window_bounds = array<i64: 8, 256>}]} {
    %c0 = arith.constant 0 : index
    %c0_0 = arith.constant 0 : index
    %0 = vector.load %arg2[%c0, %c0_0] : memref<8x256xf32, #tpu.memory_space<vmem>>, vector<8x256xf32>
    %c0_1 = arith.constant 0 : index
    %c0_2 = arith.constant 0 : index
    %1 = vector.load %arg3[%c0_1, %c0_2] : memref<8x2xf32, #tpu.memory_space<vmem>>, vector<8x1xf32>
    %c0_3 = arith.constant 0 : index
    %c1 = arith.constant 1 : index
    %2 = vector.load %arg3[%c0_3, %c1] : memref<8x2xf32, #tpu.memory_space<vmem>>, vector<8x1xf32>
    %3 = vector.broadcast %1 : vector<8x1xf32> to vector<8x256xf32>
    %4 = arith.mulf %0, %3 : vector<8x256xf32>
    %5 = vector.broadcast %2 : vector<8x1xf32> to vector<8x256xf32>
    %6 = arith.addf %4, %5 : vector<8x256xf32>
    %cst = arith.constant 0.000000e+00 : f32
    %7 = vector.broadcast %cst : f32 to vector<8x256xf32>
    %8 = arith.maximumf %6, %7 : vector<8x256xf32>
    %c0_4 = arith.constant 0 : index
    %c0_5 = arith.constant 0 : index
    %9 = vector.load %arg4[%c0_4, %c0_5] : memref<8x256xf32, #tpu.memory_space<vmem>>, vector<8x256xf32>
    tpu.vector_store %arg4[%c0_4, %c0_5], %8 {strides = array<i32>} : memref<8x256xf32, #tpu.memory_space<vmem>>, vector<8x256xf32>,
    return
  }
  func.func @transform_0(%arg0: i32, %arg1: i32) -> (i32, i32) {
    %c0_i32 = arith.constant 0 : i32
    return %arg0, %arg1 : i32, i32
  }
  func.func @transform_1(%arg0: i32, %arg1: i32) -> (i32, i32) {
    %c0_i32 = arith.constant 0 : i32
    %c0_i32_0 = arith.constant 0 : i32
    return %arg0, %c0_i32 : i32, i32
  }
  func.func @transform_2(%arg0: i32, %arg1: i32) -> (i32, i32) {
    %c0_i32 = arith.constant 0 : i32
    return %arg0, %arg1 : i32, i32
  }
}

</mosaic_0001>

<bundles_post_ra>
// kernel: tpu_custom_call.1
= control target key start
LH: loop header
LB: loop body
LE: loop exit
PB: predicated region body
PF: predicated region fallthrough
CT: control target
= control target key end

     0   :  { %7 = vsyncpa [#allocation3], 0  ;;  %s137_s0 = inlined_call_operand.hbm [shape: f32[8,256], index: 0, kind: input, shape index: {}]   ;;  %s138_s1 = inlined_call_operand.vmem [shape: f32[8,2], index: 1, kind: input, shape index: {}]   ;;  %s139_s2 = inlined_call_operand.hbm [shape: f32[8,256], index: 2, kind: output, shape index: {}]  }
   0x1   :  { %8 = vsyncpa [#allocation4], 0  ;;  %s109_s9 = smov [#allocation2]  }
   0x2   :  { %s15_s10 = sshll.u32 %s109_s9, 4  ;;  %s16_s10 = int_to_ptr.vmem [resolvable:$true] %s15_s10 }
   0x3   :  { %s73_s11 = scalar_lea.vmem %s16_s10, 256  ;;  %p78_p1 = scmp.lt.s32.totalorder %s16_s10, %s16_s10 }
   0x4   :  { %p74_p0 = scmp.ne.s32.totalorder %s16_s10, %s73_s11  ;;  %p79_p2 = scmp.lt.s32.totalorder %s73_s11, %s73_s11 }
   0x6   :  { %p80_p3 = por %p79_p2, %p78_p1 }
   0x8   :  { %p81_p4 = pnand %p80_p3, %p74_p0 }
   0xa   :  { %84 = shalt.err (!%p81_p4)
}
   0xb   :  { %18 = dma.hbm_to_vmem [thread:$0]  %s137_s0, 256, %s16_s10, [#allocation3]  }
   0xc   :  { %105 = dma.done.wait [#allocation3], 256  }
   0xd   :  { %106 = vsyncadd [#allocation3], 4294967040  ;;  %v110_v0 = vmov 0   ;;  %v26_v1 = vld [vmem:[%s138_s1] sm:$0xff]  ;;  %v111_v2 = vmov 1   ;;  %v25_v5 = vld [vmem:[#allocation2 + $0x8] sm:$0xff] }
   0xe   :  { %63 = vset.pattern.permute.xlu0 %v110_v0  ;;  %v24_v4 = vld [vmem:[#allocation2] sm:$0xff]  ;;  %s112_s16 = smov [#allocation5]  }
   0xf   :  { %29 = vperm.xlu0 %63, %v26_v1   ;;  %s50_s0 = sshll.u32 %s112_s16, 4  ;;  %s51_s0 = int_to_ptr.vmem [resolvable:$true] %s50_s0 }
  0x10   :  { %s85_s1 = scalar_lea.vmem %s51_s0, 256  ;;  %p90_p6 = scmp.lt.s32.totalorder %s51_s0, %s51_s0 }
  0x11   :  { %p86_p5 = scmp.ne.s32.totalorder %s51_s0, %s85_s1  ;;  %p91_p7 = scmp.lt.s32.totalorder %s85_s1, %s85_s1 }
  0x13   :  { %64 = vset.pattern.permute.xlu0 %v111_v2  ;;  %p92_p8 = por %p91_p7, %p90_p6 }
  0x14   :  { %35 = vperm.xlu0 %64, %v26_v1  }
  0x15   :  { %p93_p9 = pnand %p92_p8, %p86_p5 }
  0x8a   :  { %v30_v3 = vpop.permute.xlu0 %29 }
  0x8b   :  { %v32_v6 = vmul.f32 %v30_v3, %v24_v4  ;;  %v33_v7 = vmul.f32 %v30_v3, %v25_v5 }
  0x8f   :  { %v36_v8 = vpop.permute.xlu0 %35 }
  0x90   :  { %v38_v9 = vadd.f32 %v36_v8, %v32_v6  ;;  %v39_v10 = vadd.f32 %v36_v8, %v33_v7 }
  0x92   :  { %v40_v11 = vmax.f32 %v38_v9, 0.0  ;;  %v41_v12 = vmax.f32 %v39_v10, 0.0 }
  0x94   :  { %42 = vst [vmem:[#allocation5] sm:$0xff] %v40_v11  ;;  %43 = vst [vmem:[#allocation5 + $0x8] sm:$0xff] %v41_v12 }
  0x95   :  { %96 = shalt.err (!%p93_p9)
}
  0x96   :  { %53 = dma.vmem_to_hbm [thread:$0]  %s51_s0, 256, %s139_s2, [#allocation4]  }
  0x97   :  { %107 = dma.done.wait [#allocation4], 256  }
  0x98   :  { %108 = vsyncadd [#allocation4], 4294967040 }
  0x99   :  { %57 = vsyncpa [#allocation3], 1 }
  0x9a   :  { %58 = vsyncpa [#allocation4], 1 }

</bundles_post_ra>
